<compile_context>
chip_gen: v5e
topology: v5e:2x2
jax: 0.10.0
libtpu: 0.0.40
codegen_flags: <defaults>
</compile_context>

<pallas_src>
import jax
import jax.numpy as jnp
from jax.experimental import pallas as pl
from jax.experimental.pallas import tpu as pltpu


def deconv_relu_kernel(x_ref, w_ref, b_ref, o_ref):
    """o = relu(W @ x + b): (Cout*4, Cin) @ (Cin, t_hw) -> (Cout*4, t_hw)."""
    acc = jnp.dot(w_ref[...], x_ref[...], preferred_element_type=jnp.float32)
    acc = acc + b_ref[...]                      # (Cout*4, 1) broadcast over lanes
    o_ref[...] = jnp.maximum(acc, 0.0).astype(o_ref.dtype)


def _choose_hw_tile(hw, cin, cout4, target_lanes=2048,
                    vmem_budget=24 * 1024 * 1024):
    """Pad HW to a lane multiple; pick the largest tile that divides it, is
    <= target_lanes, and keeps the double-buffered blocks under budget."""
    lane = 128
    hwp = -(-hw // lane) * lane

    cin_p = -(-cin // 8) * 8
    cout4_p = -(-cout4 // 8) * 8

    def fits(t):
        blocks = 4 * (2 * cin_p * t + 2 * cout4_p * t)   # dbl-buffered X and Y
        blocks += 4 * cout4_p * cin_p + 4 * cout4_p      # resident W^T and bias
        return blocks <= vmem_budget

    t_hw = lane
    cand = lane
    while cand <= min(target_lanes, hwp):
        if hwp % cand == 0 and fits(cand):
            t_hw = cand
        cand += lane
    return t_hw, hwp


def deconv2d_bn_forward(x, weight, bias, *, target_lanes=2048):
    """x: (N, Cin, H, W); weight: (Cin, Cout, 2, 2) [PyTorch ConvTranspose2d
    layout]; bias: (Cout,).  Returns relu(conv_transpose2d(x)) of shape
    (N, Cout, 2H, 2W)."""
    N, Cin, H, W = x.shape
    Cout = weight.shape[1]
    K = 2
    HW = H * W
    Cout4 = Cout * K * K

    # Free view of the NCHW input: spatial flattened onto the minor (lane) axis.
    x3 = x.reshape(N, Cin, HW)

    # Tiny weight/bias rearrangements (one-off, cheap XLA ops on small tensors).
    w_mat = weight.reshape(Cin, Cout4).T                 # (Cout*4, Cin), rows (co,kh,kw)
    b_col = jnp.repeat(bias, K * K).reshape(Cout4, 1)    # (Cout*4, 1)

    t_hw, HWp = _choose_hw_tile(HW, Cin, Cout4, target_lanes)
    if HWp != HW:
        x3 = jnp.pad(x3, ((0, 0), (0, 0), (0, HWp - HW)))

    n_hw = HWp // t_hw
    # Keep at least 2 grid steps so both v7x TensorCores get work.
    if N * n_hw < 2 and t_hw >= 2 * 128:
        t_hw //= 2
        n_hw = HWp // t_hw

    y = pl.pallas_call(
        deconv_relu_kernel,
        out_shape=jax.ShapeDtypeStruct((N, Cout4, HWp), x.dtype),
        grid_spec=pltpu.PrefetchScalarGridSpec(
            num_scalar_prefetch=0,
            grid=(N, n_hw),
            in_specs=[
                pl.BlockSpec((None, Cin, t_hw), lambda n, j: (n, 0, j)),   # X tile
                pl.BlockSpec((Cout4, Cin), lambda n, j: (0, 0)),           # full W^T
                pl.BlockSpec((Cout4, 1), lambda n, j: (0, 0)),             # bias col
            ],
            out_specs=pl.BlockSpec((None, Cout4, t_hw), lambda n, j: (n, 0, j)),
        ),
        compiler_params=pltpu.CompilerParams(
            dimension_semantics=("parallel", "parallel")),
    )(x3, w_mat, b_col)

    # (N, Cout*4, HWp) -> crop lane padding -> (N, Cout, kh, kw, H, W)
    y = y[:, :, :HW].reshape(N, Cout, K, K, H, W)
    # Single XLA pass: interleave the non-overlapping 2x2 patches -> NCHW.
    y = jnp.transpose(y, (0, 1, 4, 2, 5, 3)).reshape(N, Cout, H * K, W * K)
    return y


def reference_forward(x, weight, bias):
    """Independent plain-JAX reference for ConvTranspose2d(k=2, s=2) + ReLU."""
    N, Cin, H, W = x.shape
    Cout = weight.shape[1]
    K = 2
    # out[n, co, 2h+kh, 2w+kw] = sum_ci x[n,ci,h,w] * W[ci,co,kh,kw] + b[co]
    y = jnp.einsum("nchw,cokl->nohwkl", x, weight)
    y = y + bias[None, :, None, None, None, None]
    y = jnp.transpose(y, (0, 1, 2, 4, 3, 5)).reshape(N, Cout, H * K, W * K)
    return jnp.maximum(y, 0.0)


if __name__ == "__main__":
    N, Cin, Cout, H, W = 2, 4, 8, 16, 16
    key = jax.random.PRNGKey(0)
    kx, kw, kb = jax.random.split(key, 3)

    x = jax.random.normal(kx, (N, Cin, H, W), dtype=jnp.float32)
    # Deterministic ConvTranspose2d-style init: weight (Cin, Cout, 2, 2).
    bound = 1.0 / (Cin * 2 * 2) ** 0.5
    weight = jax.random.uniform(kw, (Cin, Cout, 2, 2), jnp.float32,
                                minval=-bound, maxval=bound)
    bias = jax.random.uniform(kb, (Cout,), jnp.float32,
                              minval=-bound, maxval=bound)

    out = jax.block_until_ready(deconv2d_bn_forward(x, weight, bias))

    ref = reference_forward(x, weight, bias)
    assert out.shape == (N, Cout, 2 * H, 2 * W), out.shape
    assert jnp.allclose(out, ref, atol=1e-5, rtol=1e-5), \
        float(jnp.max(jnp.abs(out - ref)))

    print("KERNEL_OK")
</pallas_src>

<mosaic_0001>
module attributes {stable_mosaic.version = 11 : i64} {
  func.func @deconv_relu_kernel(%arg0: i32, %arg1: i32, %arg2: memref<1x4x256xf32, #tpu.memory_space<vmem>>, %arg3: memref<32x4xf32, #tpu.memory_space<vmem>>, %arg4: memref<32x1xf32, #tpu.memory_space<vmem>>, %arg5: memref<1x32x256xf32, #tpu.memory_space<vmem>>) attributes {dimension_semantics = [#tpu.dimension_semantics<parallel>, #tpu.dimension_semantics<parallel>], iteration_bounds = array<i64: 2, 1>, scalar_prefetch = 0 : i64, scratch_operands = 0 : i64, tpu.core_type = #tpu.core_type<tc>, window_params = [{transform_indices = @transform_0, window_bounds = array<i64: 1, 4, 256>}, {pipeline_mode = #tpu.pipeline_mode<synchronous>, transform_indices = @transform_1, window_bounds = array<i64: 32, 4>}, {pipeline_mode = #tpu.pipeline_mode<synchronous>, transform_indices = @transform_2, window_bounds = array<i64: 32, 1>}, {transform_indices = @transform_3, window_bounds = array<i64: 1, 32, 256>}]} {
    %c0 = arith.constant 0 : index
    %c0_0 = arith.constant 0 : index
    %0 = vector.load %arg3[%c0, %c0_0] : memref<32x4xf32, #tpu.memory_space<vmem>>, vector<32x4xf32>
    %c0_1 = arith.constant 0 : index
    %c0_2 = arith.constant 0 : index
    %c0_3 = arith.constant 0 : index
    %1 = vector.load %arg2[%c0_1, %c0_2, %c0_3] : memref<1x4x256xf32, #tpu.memory_space<vmem>>, vector<1x4x256xf32>
    %2 = vector.shape_cast %1 : vector<1x4x256xf32> to vector<4x256xf32>
    %cst = arith.constant dense<0.000000e+00> : vector<32x256xf32>
    %3 = tpu.matmul %0, %2, %cst {dimension_numbers = #tpu.dot_dimension_numbers<[1], [0], [0], [1], [0, 0, 1, 1], [], []>} : vector<32x4xf32>, vector<4x256xf32>, vector<32x256xf32> -> vector<32x256xf32>
    %c0_4 = arith.constant 0 : index
    %c0_5 = arith.constant 0 : index
    %4 = vector.load %arg4[%c0_4, %c0_5] : memref<32x1xf32, #tpu.memory_space<vmem>>, vector<32x1xf32>
    %5 = vector.broadcast %4 : vector<32x1xf32> to vector<32x256xf32>
    %6 = arith.addf %3, %5 : vector<32x256xf32>
    %cst_6 = arith.constant 0.000000e+00 : f32
    %7 = vector.broadcast %cst_6 : f32 to vector<32x256xf32>
    %8 = arith.maximumf %6, %7 : vector<32x256xf32>
    %c0_7 = arith.constant 0 : index
    %c0_8 = arith.constant 0 : index
    %c0_9 = arith.constant 0 : index
    %9 = vector.load %arg5[%c0_7, %c0_8, %c0_9] : memref<1x32x256xf32, #tpu.memory_space<vmem>>, vector<1x32x256xf32>
    %10 = vector.shape_cast %9 : vector<1x32x256xf32> to vector<32x256xf32>
    %11 = vector.shape_cast %8 : vector<32x256xf32> to vector<1x32x256xf32>
    tpu.vector_store %arg5[%c0_7, %c0_8, %c0_9], %11 {strides = array<i32>} : memref<1x32x256xf32, #tpu.memory_space<vmem>>, vector<1x32x256xf32>,
    return
  }
  func.func @transform_0(%arg0: i32, %arg1: i32) -> (i32, i32, i32) {
    %c0_i32 = arith.constant 0 : i32
    %c0_i32_0 = arith.constant 0 : i32
    return %arg0, %c0_i32, %arg1 : i32, i32, i32
  }
  func.func @transform_1(%arg0: i32, %arg1: i32) -> (i32, i32) {
    %c0_i32 = arith.constant 0 : i32
    %c0_i32_0 = arith.constant 0 : i32
    %c0_i32_1 = arith.constant 0 : i32
    return %c0_i32, %c0_i32_0 : i32, i32
  }
  func.func @transform_2(%arg0: i32, %arg1: i32) -> (i32, i32) {
    %c0_i32 = arith.constant 0 : i32
    %c0_i32_0 = arith.constant 0 : i32
    %c0_i32_1 = arith.constant 0 : i32
    return %c0_i32, %c0_i32_0 : i32, i32
  }
  func.func @transform_3(%arg0: i32, %arg1: i32) -> (i32, i32, i32) {
    %c0_i32 = arith.constant 0 : i32
    %c0_i32_0 = arith.constant 0 : i32
    return %arg0, %c0_i32, %arg1 : i32, i32, i32
  }
}

</mosaic_0001>

<bundles_post_ra>
// kernel: tpu_custom_call.1
= control target key start
LH: loop header
LB: loop body
LE: loop exit
PB: predicated region body
PF: predicated region fallthrough
CT: control target
= control target key end

     0   :  { %8 = vsyncpa [#allocation3], 0  ;;  %s756_s0 = inlined_call_operand.vmem [shape: f32[2,4,256], index: 0, kind: input, shape index: {}]   ;;  %s757_s1 = inlined_call_operand.vmem [shape: f32[32,4], index: 1, kind: input, shape index: {}]   ;;  %s758_s2 = inlined_call_operand.vmem [shape: f32[32,1], index: 2, kind: input, shape index: {}]   ;;  %s759_s3 = inlined_call_operand.hbm [shape: f32[2,32,256], index: 3, kind: output, shape index: {}]  }
   0x1   :  { %10 = vsyncpa [#allocation3 + $0x1], 0  ;;  %s612_s12 = smov 0   ;;  %s614_s13 = smov 0  }
   0x2   :  { %s616_s14 = smov 0   ;;  %s618_s15 = smov 0  }
   0x3   :  { %s620_s16 = smov 0   ;;  %s622_s17 = smov 0  }
   0x4 LB: > { %s422_s18 = sadd.s32 4294967295, %s587_s17   ;;  %s423_s19 = sadd.s32 4294967294, %s587_s17   ;;  %s587_s17 = sphi %s622_s17, %s16_s17   ;;  %s583_s16 = sphi %s620_s16, %s766_s16   ;;  %s579_s15 = sphi %s618_s15, %s765_s15   ;;  %s575_s14 = sphi %s616_s14, %s764_s14   ;;  %s571_s13 = sphi %s614_s13, %s763_s13   ;;  %s567_s12 = sphi %s612_s12, %s762_s12  }
   0x5   : > { %s28_s20 = sadd.s32 1, %s583_s16  ;;  %s107_s21 = sadd.s32 1, %s575_s14 }
   0x6   : > { %p30_p0 = scmp.ge.s32.totalorder %s28_s20, 2  ;;  %p117_p1 = scmp.ne.s32.totalorder %s575_s14, %s571_s13 }
   0x7   : > { %p118_p2 = scmp.eq.s32.totalorder %s422_s18, 1  ;;  %p123_p3 = scmp.ne.s32.totalorder %s571_s13, %s567_s12 }
   0x8   : > { %s768_s20 = smov (%p30_p0, %s28_s20), 0  ;;  %p124_p5 = scmp.eq.s32.totalorder %s423_s19, 1 }
   0x9   : > { %p652_p4 = por %p118_p2, %p117_p1  ;;  %s102_s23 = ssub.s32 %s583_s16, %s768_s20 }
   0xa   : > { %p426_p6 = scmp.ge.s32.totalorder %s587_s17, 1  ;;  %p105_p7 = scmp.eq.s32.totalorder %s102_s23, 0 }
   0xb   : > { %p659_p8 = por %p124_p5, %p123_p3  ;;  %p161_p9 = scmp.lt.s32.totalorder %s587_s17, 3 }
   0xc   : > { %s665_s25 = scalar_select %p105_p7, %s575_s14, %s107_s21  }
   0xd   : > { %p162_p10 = pnand %p426_p6, %p161_p9 }
   0xe   : > { %p190_p11 = scmp.lt.s32.totalorder (!%p162_p10), %s579_s15, 1  ;;  %s186_s30 = sand.u32 (!%p162_p10), 1, %s571_s13  }
   0xf   : > { %165 = sbr.rel (%p162_p10) target bundleno = 184 (0xb8), region = 32  ;;  %s446_s6 = sshll.u32 (!%p162_p10), %s579_s15, 6 }
  0x10   : > { %s339_s9 = scalar_lea.hbm (!%p162_p10), %s759_s3, %s446_s6  ;;  %s326_s11 = scalar_lea.sflag (!%p162_p10), [#allocation3], %s186_s30 }
  0x11   : > { %s342_s10 = sshll.u32 (!%p162_p10), %s339_s9, 4  ;;  %s529_s26 = scalar_lea.hbm (!%p162_p10), %s759_s3, 128  ;;  %s343_s10 = int_to_ptr.hbm [resolvable:$true] %s342_s10 }
  0x12   : > { %s523_s18 = sshra.s32 (!%p162_p10), %s343_s10, 4  ;;  %s524_s18 = int_to_ptr.hbm [resolvable:$true] %s523_s18 }
  0x13   : > { %s525_s19 = scalar_lea.hbm (!%p162_p10), %s524_s18, 64  ;;  %p530_p1 = scmp.lt.s32.totalorder (!%p162_p10), %s524_s18, %s759_s3 }
  0x14   : > { %v589_v0 = vmov 0   ;;  %v207_v1 = vld [vmem:[%s758_s2 + $0x10] sm:$0xff]  ;;  %s191_s28 = scalar_select %p190_p11, %s579_s15, 1  ;;  %v205_v2 = vld [vmem:[%s758_s2] sm:$0xff]  ;;  %v208_v4 = vld [vmem:[%s758_s2 + $0x18] sm:$0xff]  ;;  %vm246_vm0 = vcmask 1043456  }
  0x15   : > { %508 = vset.pattern.permute.xlu1 %v589_v0  ;;  %507 = vset.pattern.permute.xlu0 %v589_v0  ;;  %v206_v5 = vld [vmem:[%s758_s2 + $0x8] sm:$0xff]  ;;  %v200_v6 = vld [vmem:[%s757_s1] sm:$0xff]  ;;  %vm233_vm1 = vcmask 31744   ;;  %v202_v7 = vld [vmem:[%s757_s1 + $0x10] sm:$0xff]  ;;  %p526_p12 = scmp.ne.s32.totalorder %s524_s18, %s525_s19  ;;  %p531_p2 = scmp.lt.s32.totalorder %s529_s26, %s525_s19 }
  0x16   : > { %221 = vperm.xlu1 %508, %v207_v1   ;;  %211 = vperm.xlu0 %507, %v205_v2   ;;  %s445_s4 = sshll.u32 %s191_s28, 3  ;;  %v201_v10 = vld [vmem:[%s757_s1 + $0x8] sm:$0xff]  ;;  %v203_v11 = vld [vmem:[%s757_s1 + $0x18] sm:$0xff] }
  0x17   : > { %s197_s7 = scalar_lea.vmem %s756_s0, %s445_s4  ;;  %s427_s4 = sshll.u32 %s186_s30, 6 }
  0x18   : > { %v204_v3 = vld [vmem:[%s197_s7] sm:$0xff]  ;;  %s707_s5 = scalar_lea.vmem [#allocation2], %s427_s4  ;;  %p527_p13 = pnand %p526_p12, %p652_p4 }
  0x19   : > { %230 = vst [vmem:[#allocation1] ss:$2 sm:$0xff] %v204_v3  ;;  %s340_s15 = sshll.u32 %s707_s5, 4  ;;  %p532_p3 = por %p531_p2, %p530_p1  ;;  %s341_s15 = int_to_ptr.vmem [resolvable:$true] %s340_s15 }
  0x1a   : > { %p528_p0 = pneg %p527_p13 }
  0x1c   : > { %p533_p5 = pnand %p532_p3, %p528_p0 }
  0x1e   : > { %226 = vperm.xlu1 %508, %v208_v4   ;;  %216 = vperm.xlu0 %507, %v206_v5  }
  0x20   : > { %v231_v8 = vld.sshfl [vmem:[#allocation1] sm:$0xff pattern:$0x75316420]  ;;  %v232_v9 = vld.sshfl [vmem:[#allocation1 + $0x8] sm:$0xff pattern:$0x75316420] }
  0x21   : > { %430 = vmatpush.msk.msra.mxu0 %vm246_vm0, %v231_v8  ;;  %447 = vmatpush.msk.msra.mxu2 %vm246_vm0, %v231_v8 }
  0x22   : > { %435 = vmatpush.msk.msra.mxu1 %vm246_vm0, %v232_v9  ;;  %448 = vmatpush.msk.msra.mxu3 %vm246_vm0, %v232_v9 }
  0x23   : > { %431 = vmatmul.msk.f32.vlgmr.msra.gmra.mxu0 %vm233_vm1, %v200_v6  ;;  %433 = vmatmul.msk.f32.vlgmr.msra.gmra.mxu2 %vm233_vm1, %v202_v7 }
  0x24   : > { %436 = vmatmul.msk.f32.vlgmr.msra.gmra.mxu1 %vm233_vm1, %v200_v6  ;;  %438 = vmatmul.msk.f32.vlgmr.msra.gmra.mxu3 %vm233_vm1, %v202_v7 }
  0x2b   : > { %432 = vmatmul.msk.f32.gmra.mxu0 %vm233_vm1, %v201_v10  ;;  %434 = vmatmul.msk.f32.gmra.mxu2 %vm233_vm1, %v203_v11 }
  0x2c   : > { %437 = vmatmul.msk.f32.gmra.mxu1 %vm233_vm1, %v201_v10  ;;  %439 = vmatmul.msk.f32.gmra.mxu3 %vm233_vm1, %v203_v11 }
  0x88   : > { %v212_v12 = vpop.permute.xlu0 %211  ;;  %v222_v18 = vpop.permute.xlu1 %221 }
  0x90   : > { %v217_v23 = vpop.permute.xlu0 %216  ;;  %v227_v33 = vpop.permute.xlu1 %226 }
  0xa0   : > { %v268_v13 = vpop.f32.mrf.mxu0 }
  0xa1   : > { %v269_v14 = vadd.f32 %v268_v13, %v212_v12  ;;  %v297_v15 = vpop.f32.mrf.mxu1 }
  0xa2   : > { %v298_v16 = vadd.f32 %v297_v15, %v212_v12 }
  0xa3   : > { %v309_v17 = vmax.f32 %v269_v14, 0.0 }
  0xa4   : > { %v310_v19 = vmax.f32 %v298_v16, 0.0 }
  0xa5   : > { %317 = vst [vmem:[%s707_s5] sm:$0xff] %v309_v17 }
  0xa6   : > { %318 = vst [vmem:[%s707_s5 + $0x8] sm:$0xff] %v310_v19  ;;  %v274_v20 = vpop.f32.mrf.mxu2 }
  0xa7   : > { %v275_v21 = vadd.f32 %v274_v20, %v222_v18  ;;  %v303_v22 = vpop.f32.mrf.mxu3 }
  0xa8   : > { %v304_v24 = vadd.f32 %v303_v22, %v222_v18  ;;  %v271_v25 = vpop.f32.mrf.mxu0 }
  0xa9   : > { %v313_v26 = vmax.f32 %v275_v21, 0.0  ;;  %v272_v27 = vadd.f32 %v271_v25, %v217_v23  ;;  %v300_v28 = vpop.f32.mrf.mxu1 }
  0xaa   : > { %v314_v29 = vmax.f32 %v304_v24, 0.0  ;;  %v301_v30 = vadd.f32 %v300_v28, %v217_v23 }
  0xab   : > { %321 = vst [vmem:[%s707_s5 + $0x20] sm:$0xff] %v313_v26  ;;  %v311_v31 = vmax.f32 %v272_v27, 0.0 }
  0xac   : > { %322 = vst [vmem:[%s707_s5 + $0x28] sm:$0xff] %v314_v29  ;;  %v312_v32 = vmax.f32 %v301_v30, 0.0 }
  0xad   : > { %319 = vst [vmem:[%s707_s5 + $0x10] sm:$0xff] %v311_v31 }
  0xae   : > { %320 = vst [vmem:[%s707_s5 + $0x18] sm:$0xff] %v312_v32  ;;  %v277_v34 = vpop.f32.mrf.mxu2 }
  0xaf   : > { %v278_v35 = vadd.f32 %v277_v34, %v227_v33  ;;  %v306_v36 = vpop.f32.mrf.mxu3 }
  0xb0   : > { %v307_v37 = vadd.f32 %v306_v36, %v227_v33 }
  0xb1   : > { %v315_v38 = vmax.f32 %v278_v35, 0.0 }
  0xb2   : > { %v316_v39 = vmax.f32 %v307_v37, 0.0 }
  0xb3   : > { %323 = vst [vmem:[%s707_s5 + $0x30] sm:$0xff] %v315_v38 }
  0xb4   : > { %324 = vst [vmem:[%s707_s5 + $0x38] sm:$0xff] %v316_v39 }
  0xb5   : > { %536 = shalt.err (!%p533_p5)
}
  0xb6   : > { %s590_s29 = smov 256   ;;  %s591_s30 = smov 16  }
  0xb7   : > { %449 = dma.vmem_to_hbm [thread:$0]  (%p652_p4), %s341_s15, 1024, %s343_s10, %s326_s11, %s590_s29, %s590_s29, %s591_s30  }
  0xb8 PF: > { %p455_p6 = scmp.ge.s32.totalorder %s587_s17, 2  ;;  %s357_s4 = sand.u32 1, %s567_s12  }
  0xb9   : > { %s358_s5 = scalar_lea.sflag [#allocation3], %s357_s4 }
  0xba   : > { %p452_p7 = pnand %p455_p6, %p659_p8 }
  0xbc   : > { %p453_p9 = pneg %p452_p7 }
  0xbe   : > { %562 = dma.done.wait (%p453_p9), %s358_s5, 1024  }
  0xbf   : > { %564 = vsyncadd (%p453_p9), %s358_s5, 4294966272  ;;  %s16_s17 = sadd.s32 1, %s587_s17   ;;  %s762_s12 = smov %s571_s13 }
  0xc0   : > { %p13_p10 = scmp.ge.s32.totalorder %s16_s17, 4   ;;  %s763_s13 = smov %s575_s14 }
  0xc1   : > { %s764_s14 = smov %s665_s25  ;;  %s765_s15 = smov %s583_s16 }
  0xc2   : > { %s766_s16 = smov %s768_s20  ;;  %15 = sbr.rel (!%p13_p10) target bundleno = 4 (0x4), region = 67 }
  0xc7   :  { %364 = vsyncpa [#allocation3], 1 }
  0xc8   :  { %366 = vsyncpa [#allocation3 + $0x1], 1 }

</bundles_post_ra>
